<compile_context>
chip_gen: v7x
topology: tpu7x:2x2x1
jax: 0.10.0
libtpu: 0.0.40
codegen_flags: <defaults>
</compile_context>

<pallas_src>
import jax
import jax.numpy as jnp
from jax.experimental import pallas as pl
from jax.experimental.pallas import tpu as pltpu


def _attention_kernel(x_ref, wq_ref, wk_ref, wv_ref, wp_ref, b_ref, o_ref,
                      acc_ref):
    """One grid step = one (batch, head) pair.

    x_ref  : (1, N, C)  bf16  activations for batch b (resident across heads)
    wq_ref : (1, C, hd) bf16  per-head q weight, 1/sqrt(hd) pre-folded
    wk_ref : (1, C, hd) bf16  per-head k weight
    wv_ref : (1, C, hd) bf16  per-head v weight
    wp_ref : (1, hd, C) bf16  per-head slice of the output projection weight
    b_ref  : (1, C)     f32   output projection bias
    o_ref  : (1, N, C)        output block for batch b (written on last head)
    acc_ref: (N, C)     f32   VMEM accumulator for the output projection
    """
    h = pl.program_id(1)

    @pl.when(h == 0)
    def _init():
        # Start the accumulator from the projection bias (sublane broadcast)
        # instead of zeros, so the finalize step is just a cast + store.
        acc_ref[...] = jnp.broadcast_to(b_ref[...], acc_ref.shape)

    x = x_ref[0]                    # (N, C) bf16
    wq = wq_ref[0]                  # (C, hd) bf16 (scale folded in)
    wk = wk_ref[0]                  # (C, hd)
    wv = wv_ref[0]                  # (C, hd)
    wp = wp_ref[0]                  # (hd, C)

    # Per-head projections: bf16 inputs, f32 accumulation on the MXU.
    q = jnp.dot(x, wq, preferred_element_type=jnp.float32)      # (N, hd), pre-scaled
    k = jnp.dot(x, wk, preferred_element_type=jnp.float32)      # (N, hd)
    v = jnp.dot(x, wv, preferred_element_type=jnp.float32)      # (N, hd)

    # Scores: q @ k^T, contraction over head_dim -> (N, N) f32.
    s = jax.lax.dot_general(
        q.astype(jnp.bfloat16), k.astype(jnp.bfloat16),
        dimension_numbers=(((1,), (1,)), ((), ())),
        preferred_element_type=jnp.float32)

    # Softmax (f32 math), approx reciprocal (EUP) + multiply instead of divide.
    s = s - jnp.max(s, axis=-1, keepdims=True)
    p = jnp.exp(s)
    denom = jnp.sum(p, axis=-1, keepdims=True)
    p = p * pl.reciprocal(denom, approx=True)

    # Attention output for this head, then its contribution to the projection
    # accumulated directly into the resident (N, C) slab (no concatenate).
    o = jnp.dot(p.astype(jnp.bfloat16), v.astype(jnp.bfloat16),
                preferred_element_type=jnp.float32)              # (N, hd)
    acc_ref[...] += jnp.dot(o.astype(jnp.bfloat16), wp,
                            preferred_element_type=jnp.float32)  # (N, C)

    @pl.when(h == pl.num_programs(1) - 1)
    def _finalize():
        o_ref[0] = acc_ref[...].astype(o_ref.dtype)


def attention_forward(x, wq, wkv, wproj, bproj, *, num_heads,
                      compute_dtype=jnp.bfloat16):
    """Forward pass of `Attention` with sr_ratio=1.

    x     : (B, N, C)
    wq    : (C, C)   q weight stored as (in, out) (= PyTorch weight.T)
    wkv   : (C, 2C)  kv weight stored as (in, out)
    wproj : (C, C)   proj weight stored as (in, out)
    bproj : (C,)     proj bias
    """
    B, N, C = x.shape
    assert C % num_heads == 0, "dim should be divisible by num_heads"
    hd = C // num_heads
    scale = hd ** (-0.5)

    # ---- weight prep (cheap; in a real model do this once at init time) ----
    wk, wv = wkv[:, :C], wkv[:, C:]
    # (C, C) -> (H, C, hd): per-head column slices of the (in, out) weight.
    to_heads = lambda w: w.reshape(C, num_heads, hd).transpose(1, 0, 2)
    wq3 = to_heads(wq * scale).astype(compute_dtype)   # fold 1/sqrt(hd) into Wq
    wk3 = to_heads(wk).astype(compute_dtype)
    wv3 = to_heads(wv).astype(compute_dtype)
    # (C, C) -> (H, hd, C): per-head row slices of the proj weight.
    wp3 = wproj.reshape(num_heads, hd, C).astype(compute_dtype)
    b2 = jnp.asarray(bproj, jnp.float32).reshape(1, C)
    x_c = x.astype(compute_dtype)

    return pl.pallas_call(
        _attention_kernel,
        out_shape=jax.ShapeDtypeStruct((B, N, C), x.dtype),
        grid=(B, num_heads),
        in_specs=[
            pl.BlockSpec((1, N, C), lambda b, h: (b, 0, 0)),    # x (resident over h)
            pl.BlockSpec((1, C, hd), lambda b, h: (h, 0, 0)),   # Wq head slice
            pl.BlockSpec((1, C, hd), lambda b, h: (h, 0, 0)),   # Wk head slice
            pl.BlockSpec((1, C, hd), lambda b, h: (h, 0, 0)),   # Wv head slice
            pl.BlockSpec((1, hd, C), lambda b, h: (h, 0, 0)),   # Wproj head slice
            pl.BlockSpec((1, C), lambda b, h: (0, 0)),          # bias
        ],
        out_specs=pl.BlockSpec((1, N, C), lambda b, h: (b, 0, 0)),
        scratch_shapes=[pltpu.VMEM((N, C), jnp.float32)],
        compiler_params=pltpu.CompilerParams(
            dimension_semantics=("parallel", "arbitrary"),
            vmem_limit_bytes=32 * 1024 * 1024),
    )(x_c, wq3, wk3, wv3, wp3, b2)


def attention_reference(x, wq, wkv, wproj, bproj, *, num_heads):
    """Pure-JAX f32 reference mirroring the PyTorch forward (sr_ratio=1)."""
    B, N, C = x.shape
    hd = C // num_heads
    scale = hd ** (-0.5)
    q = (x @ wq).reshape(B, N, num_heads, hd).transpose(0, 2, 1, 3)      # B,H,N,hd
    kv = (x @ wkv).reshape(B, N, 2, num_heads, hd).transpose(2, 0, 3, 1, 4)
    k, v = kv[0], kv[1]                                                  # B,H,N,hd
    attn = jnp.einsum('bhnd,bhmd->bhnm', q, k) * scale
    attn = jax.nn.softmax(attn, axis=-1)
    out = jnp.einsum('bhnm,bhmd->bhnd', attn, v)
    out = out.transpose(0, 2, 1, 3).reshape(B, N, C)
    return out @ wproj + bproj.reshape(1, 1, C)


if __name__ == "__main__":
    B, N, C = 2, 16, 32
    num_heads = 8                       # module default; C % num_heads == 0

    key = jax.random.PRNGKey(0)
    kx, kq, kkv, kp, kb = jax.random.split(key, 5)

    x = jax.random.normal(kx, (B, N, C), dtype=jnp.float32)
    # nn.Linear(dim, dim, bias=False) -> stored as (in, out)
    wq = 0.05 * jax.random.normal(kq, (C, C), dtype=jnp.float32)
    # nn.Linear(dim, 2*dim, bias=False)
    wkv = 0.05 * jax.random.normal(kkv, (C, 2 * C), dtype=jnp.float32)
    # nn.Linear(dim, dim) with bias
    wproj = 0.05 * jax.random.normal(kp, (C, C), dtype=jnp.float32)
    bproj = 0.05 * jax.random.normal(kb, (C,), dtype=jnp.float32)

    out = attention_forward(x, wq, wkv, wproj, bproj, num_heads=num_heads)
    out = jax.block_until_ready(out)

    ref = attention_reference(x, wq, wkv, wproj, bproj, num_heads=num_heads)
    # bf16 matmul inputs + approx reciprocal vs f32 reference -> loosened tol.
    if not jnp.allclose(out, ref, atol=2e-2, rtol=2e-2):
        max_err = float(jnp.max(jnp.abs(out - ref)))
        raise AssertionError(
            f"Pallas kernel output mismatch vs JAX reference (max abs err={max_err})")

    print("KERNEL_OK")
</pallas_src>

<mosaic_0001>
module attributes {stable_mosaic.version = 11 : i64} {
  func.func @_attention_kernel(%arg0: i32, %arg1: i32, %arg2: memref<1x16x32xbf16, #tpu.memory_space<vmem>>, %arg3: memref<1x32x4xbf16, #tpu.memory_space<vmem>>, %arg4: memref<1x32x4xbf16, #tpu.memory_space<vmem>>, %arg5: memref<1x32x4xbf16, #tpu.memory_space<vmem>>, %arg6: memref<1x4x32xbf16, #tpu.memory_space<vmem>>, %arg7: memref<1x32xf32, #tpu.memory_space<vmem>>, %arg8: memref<1x16x32xf32, #tpu.memory_space<vmem>>, %arg9: memref<16x32xf32, #tpu.memory_space<vmem>>) attributes {dimension_semantics = [#tpu.dimension_semantics<parallel>, #tpu.dimension_semantics<arbitrary>], iteration_bounds = array<i64: 2, 8>, scalar_prefetch = 0 : i64, scratch_operands = 1 : i64, tpu.core_type = #tpu.core_type<tc>, window_params = [{transform_indices = @transform_0, window_bounds = array<i64: 1, 16, 32>}, {transform_indices = @transform_1, window_bounds = array<i64: 1, 32, 4>}, {transform_indices = @transform_2, window_bounds = array<i64: 1, 32, 4>}, {transform_indices = @transform_3, window_bounds = array<i64: 1, 32, 4>}, {transform_indices = @transform_4, window_bounds = array<i64: 1, 4, 32>}, {pipeline_mode = #tpu.pipeline_mode<synchronous>, transform_indices = @transform_5, window_bounds = array<i64: 1, 32>}, {transform_indices = @transform_6, window_bounds = array<i64: 1, 16, 32>}]} {
    %c0_i32 = arith.constant 0 : i32
    %0 = arith.cmpi eq, %arg1, %c0_i32 : i32
    %1 = arith.extui %0 : i1 to i32
    %c0_i32_0 = arith.constant 0 : i32
    %2 = arith.cmpi ne, %1, %c0_i32_0 : i32
    scf.if %2 {
      %c0_27 = arith.constant 0 : index
      %c0_28 = arith.constant 0 : index
      %40 = vector.load %arg7[%c0_27, %c0_28] : memref<1x32xf32, #tpu.memory_space<vmem>>, vector<1x32xf32>
      %41 = vector.shape_cast %40 : vector<1x32xf32> to vector<1x32xf32>
      %42 = vector.broadcast %41 : vector<1x32xf32> to vector<16x32xf32>
      %c0_29 = arith.constant 0 : index
      %c0_30 = arith.constant 0 : index
      %43 = vector.load %arg9[%c0_29, %c0_30] : memref<16x32xf32, #tpu.memory_space<vmem>>, vector<16x32xf32>
      tpu.vector_store %arg9[%c0_29, %c0_30], %42 {strides = array<i32>} : memref<16x32xf32, #tpu.memory_space<vmem>>, vector<16x32xf32>,
    } else {
    }
    %c0 = arith.constant 0 : index
    %c0_1 = arith.constant 0 : index
    %c0_2 = arith.constant 0 : index
    %3 = vector.load %arg2[%c0, %c0_1, %c0_2] : memref<1x16x32xbf16, #tpu.memory_space<vmem>>, vector<1x16x32xbf16>
    %4 = vector.shape_cast %3 : vector<1x16x32xbf16> to vector<16x32xbf16>
    %c0_3 = arith.constant 0 : index
    %c0_4 = arith.constant 0 : index
    %c0_5 = arith.constant 0 : index
    %5 = vector.load %arg3[%c0_3, %c0_4, %c0_5] : memref<1x32x4xbf16, #tpu.memory_space<vmem>>, vector<1x32x4xbf16>
    %6 = vector.shape_cast %5 : vector<1x32x4xbf16> to vector<32x4xbf16>
    %c0_6 = arith.constant 0 : index
    %c0_7 = arith.constant 0 : index
    %c0_8 = arith.constant 0 : index
    %7 = vector.load %arg4[%c0_6, %c0_7, %c0_8] : memref<1x32x4xbf16, #tpu.memory_space<vmem>>, vector<1x32x4xbf16>
    %8 = vector.shape_cast %7 : vector<1x32x4xbf16> to vector<32x4xbf16>
    %c0_9 = arith.constant 0 : index
    %c0_10 = arith.constant 0 : index
    %c0_11 = arith.constant 0 : index
    %9 = vector.load %arg5[%c0_9, %c0_10, %c0_11] : memref<1x32x4xbf16, #tpu.memory_space<vmem>>, vector<1x32x4xbf16>
    %10 = vector.shape_cast %9 : vector<1x32x4xbf16> to vector<32x4xbf16>
    %c0_12 = arith.constant 0 : index
    %c0_13 = arith.constant 0 : index
    %c0_14 = arith.constant 0 : index
    %11 = vector.load %arg6[%c0_12, %c0_13, %c0_14] : memref<1x4x32xbf16, #tpu.memory_space<vmem>>, vector<1x4x32xbf16>
    %12 = vector.shape_cast %11 : vector<1x4x32xbf16> to vector<4x32xbf16>
    %cst = arith.constant dense<0.000000e+00> : vector<16x4xf32>
    %13 = tpu.matmul %4, %6, %cst {dimension_numbers = #tpu.dot_dimension_numbers<[1], [0], [0], [1], [0, 0, 1, 1], [], []>} : vector<16x32xbf16>, vector<32x4xbf16>, vector<16x4xf32> -> vector<16x4xf32>
    %cst_15 = arith.constant dense<0.000000e+00> : vector<16x4xf32>
    %14 = tpu.matmul %4, %8, %cst_15 {dimension_numbers = #tpu.dot_dimension_numbers<[1], [0], [0], [1], [0, 0, 1, 1], [], []>} : vector<16x32xbf16>, vector<32x4xbf16>, vector<16x4xf32> -> vector<16x4xf32>
    %cst_16 = arith.constant dense<0.000000e+00> : vector<16x4xf32>
    %15 = tpu.matmul %4, %10, %cst_16 {dimension_numbers = #tpu.dot_dimension_numbers<[1], [0], [0], [1], [0, 0, 1, 1], [], []>} : vector<16x32xbf16>, vector<32x4xbf16>, vector<16x4xf32> -> vector<16x4xf32>
    %16 = arith.truncf %13 : vector<16x4xf32> to vector<16x4xbf16>
    %17 = arith.truncf %14 : vector<16x4xf32> to vector<16x4xbf16>
    %cst_17 = arith.constant dense<0.000000e+00> : vector<16x16xf32>
    %18 = tpu.matmul %16, %17, %cst_17 {dimension_numbers = #tpu.dot_dimension_numbers<[1], [1], [0], [0], [0, 0, 1, 0], [], []>} : vector<16x4xbf16>, vector<16x4xbf16>, vector<16x16xf32> -> vector<16x16xf32>
    %cst_18 = arith.constant dense<0xFF800000> : vector<16xf32>
    %19 = vector.multi_reduction <maximumf>, %18, %cst_18 [1] : vector<16x16xf32> to vector<16xf32>
    %20 = vector.shape_cast %19 : vector<16xf32> to vector<16x1xf32>
    %21 = vector.broadcast %20 : vector<16x1xf32> to vector<16x16xf32>
    %22 = arith.subf %18, %21 : vector<16x16xf32>
    %23 = math.exp %22 : vector<16x16xf32>
    %cst_19 = arith.constant dense<0.000000e+00> : vector<16xf32>
    %24 = vector.multi_reduction <add>, %23, %cst_19 [1] : vector<16x16xf32> to vector<16xf32>
    %25 = vector.shape_cast %24 : vector<16xf32> to vector<16x1xf32>
    %26 = tpu.reciprocal %25 {approx = true} : vector<16x1xf32> -> vector<16x1xf32>
    %27 = vector.broadcast %26 : vector<16x1xf32> to vector<16x16xf32>
    %28 = arith.mulf %23, %27 : vector<16x16xf32>
    %29 = arith.truncf %28 : vector<16x16xf32> to vector<16x16xbf16>
    %30 = arith.truncf %15 : vector<16x4xf32> to vector<16x4xbf16>
    %cst_20 = arith.constant dense<0.000000e+00> : vector<16x4xf32>
    %31 = tpu.matmul %29, %30, %cst_20 {dimension_numbers = #tpu.dot_dimension_numbers<[1], [0], [0], [1], [0, 0, 1, 1], [], []>} : vector<16x16xbf16>, vector<16x4xbf16>, vector<16x4xf32> -> vector<16x4xf32>
    %c0_21 = arith.constant 0 : index
    %c0_22 = arith.constant 0 : index
    %32 = vector.load %arg9[%c0_21, %c0_22] : memref<16x32xf32, #tpu.memory_space<vmem>>, vector<16x32xf32>
    %33 = arith.truncf %31 : vector<16x4xf32> to vector<16x4xbf16>
    %cst_23 = arith.constant dense<0.000000e+00> : vector<16x32xf32>
    %34 = tpu.matmul %33, %12, %cst_23 {dimension_numbers = #tpu.dot_dimension_numbers<[1], [0], [0], [1], [0, 0, 1, 1], [], []>} : vector<16x4xbf16>, vector<4x32xbf16>, vector<16x32xf32> -> vector<16x32xf32>
    %35 = arith.addf %32, %34 : vector<16x32xf32>
    %c0_24 = arith.constant 0 : index
    %c0_25 = arith.constant 0 : index
    %36 = vector.load %arg9[%c0_24, %c0_25] : memref<16x32xf32, #tpu.memory_space<vmem>>, vector<16x32xf32>
    tpu.vector_store %arg9[%c0_24, %c0_25], %35 {strides = array<i32>} : memref<16x32xf32, #tpu.memory_space<vmem>>, vector<16x32xf32>,
    %c7_i32 = arith.constant 7 : i32
    %37 = arith.cmpi eq, %arg1, %c7_i32 : i32
    %38 = arith.extui %37 : i1 to i32
    %c0_i32_26 = arith.constant 0 : i32
    %39 = arith.cmpi ne, %38, %c0_i32_26 : i32
    scf.if %39 {
      %c0_27 = arith.constant 0 : index
      %c0_28 = arith.constant 0 : index
      %40 = vector.load %arg9[%c0_27, %c0_28] : memref<16x32xf32, #tpu.memory_space<vmem>>, vector<16x32xf32>
      %c0_29 = arith.constant 0 : index
      %c0_30 = arith.constant 0 : index
      %c0_31 = arith.constant 0 : index
      %41 = vector.load %arg8[%c0_29, %c0_30, %c0_31] : memref<1x16x32xf32, #tpu.memory_space<vmem>>, vector<1x16x32xf32>
      %42 = vector.shape_cast %41 : vector<1x16x32xf32> to vector<16x32xf32>
      %43 = vector.shape_cast %40 : vector<16x32xf32> to vector<1x16x32xf32>
      tpu.vector_store %arg8[%c0_29, %c0_30, %c0_31], %43 {strides = array<i32>} : memref<1x16x32xf32, #tpu.memory_space<vmem>>, vector<1x16x32xf32>,
    } else {
    }
    return
  }
  func.func @transform_0(%arg0: i32, %arg1: i32) -> (i32, i32, i32) {
    %c0_i32 = arith.constant 0 : i32
    %c0_i32_0 = arith.constant 0 : i32
    %c0_i32_1 = arith.constant 0 : i32
    return %arg0, %c0_i32, %c0_i32_0 : i32, i32, i32
  }
  func.func @transform_1(%arg0: i32, %arg1: i32) -> (i32, i32, i32) {
    %c0_i32 = arith.constant 0 : i32
    %c0_i32_0 = arith.constant 0 : i32
    %c0_i32_1 = arith.constant 0 : i32
    return %arg1, %c0_i32, %c0_i32_0 : i32, i32, i32
  }
  func.func @transform_2(%arg0: i32, %arg1: i32) -> (i32, i32, i32) {
    %c0_i32 = arith.constant 0 : i32
    %c0_i32_0 = arith.constant 0 : i32
    %c0_i32_1 = arith.constant 0 : i32
    return %arg1, %c0_i32, %c0_i32_0 : i32, i32, i32
  }
  func.func @transform_3(%arg0: i32, %arg1: i32) -> (i32, i32, i32) {
    %c0_i32 = arith.constant 0 : i32
    %c0_i32_0 = arith.constant 0 : i32
    %c0_i32_1 = arith.constant 0 : i32
    return %arg1, %c0_i32, %c0_i32_0 : i32, i32, i32
  }
  func.func @transform_4(%arg0: i32, %arg1: i32) -> (i32, i32, i32) {
    %c0_i32 = arith.constant 0 : i32
    %c0_i32_0 = arith.constant 0 : i32
    %c0_i32_1 = arith.constant 0 : i32
    return %arg1, %c0_i32, %c0_i32_0 : i32, i32, i32
  }
  func.func @transform_5(%arg0: i32, %arg1: i32) -> (i32, i32) {
    %c0_i32 = arith.constant 0 : i32
    %c0_i32_0 = arith.constant 0 : i32
    %c0_i32_1 = arith.constant 0 : i32
    return %c0_i32, %c0_i32_0 : i32, i32
  }
  func.func @transform_6(%arg0: i32, %arg1: i32) -> (i32, i32, i32) {
    %c0_i32 = arith.constant 0 : i32
    %c0_i32_0 = arith.constant 0 : i32
    %c0_i32_1 = arith.constant 0 : i32
    return %arg0, %c0_i32, %c0_i32_0 : i32, i32, i32
  }
}

</mosaic_0001>

<bundles_post_ra>
// kernel: tpu_custom_call.1
= control target key start
LH: loop header
LB: loop body
LE: loop exit
PB: predicated region body
PF: predicated region fallthrough
CT: control target
= control target key end

     0   :  { %11 = vsyncpa [#allocation4], 0  ;;  %s1369_s0 = inlined_call_operand.vmem [shape: bf16[2,16,32], index: 0, kind: input, shape index: {}]   ;;  %s1370_s1 = inlined_call_operand.vmem [shape: bf16[8,32,4], index: 1, kind: input, shape index: {}]   ;;  %s1371_s2 = inlined_call_operand.vmem [shape: bf16[8,32,4], index: 2, kind: input, shape index: {}]   ;;  %s1372_s3 = inlined_call_operand.vmem [shape: bf16[8,32,4], index: 3, kind: input, shape index: {}]   ;;  %s1373_s4 = inlined_call_operand.vmem [shape: bf16[8,4,32], index: 4, kind: input, shape index: {}]   ;;  %s1374_s5 = inlined_call_operand.vmem [shape: f32[1,32], index: 5, kind: input, shape index: {}]   ;;  %s1375_s6 = inlined_call_operand.hbm [shape: f32[2,16,32], index: 6, kind: output, shape index: {}]  }
   0x1   :  { %13 = vsyncpa [#allocation4 + $0x1], 0  ;;  %s1178_s21 = smov 0   ;;  %s1180_s22 = smov 0  }
   0x2   :  { %s1182_s23 = smov 0   ;;  %s1184_s24 = smov 0  }
   0x3   :  { %s1186_s25 = smov 0   ;;  %s1188_s26 = smov 0  }
   0x4   :  { %s1190_s27 = smov 0   ;;  %s1192_s28 = smov 0  }
   0x5 LB: > { %1383 = sst [smem:[#allocation6_spill]] %s1108_s21  ;;  %s854_s29 = sadd.s32 4294967295, %s1136_s28   ;;  %s1136_s28 = sphi %s1192_s28, %s19_s28   ;;  %s1132_s27 = sphi %s1190_s27, %s1401_s27   ;;  %s1128_s26 = sphi %s1188_s26, %s1404_s26   ;;  %s1124_s25 = sphi %s1186_s25, %s1399_s25   ;;  %s1120_s24 = sphi %s1184_s24, %s1398_s24   ;;  %s1116_s23 = sphi %s1182_s23, %s1397_s23   ;;  %s1112_s22 = sphi %s1180_s22, %s1403_s22   ;;  %s1108_s21 = sphi %s1178_s21, %s1402_s21  }
   0x6   : > { %1384 = sst [smem:[#allocation7_spill]] %s1116_s23  ;;  %s855_s30 = sadd.s32 4294967294, %s1136_s28  }
   0x7   : > { %1385 = sst [smem:[#allocation8_spill]] %s1128_s26  ;;  %s28_s7 = sadd.s32 1, %s1128_s26 }
   0x8   : > { %1386 = sst [smem:[#allocation9_spill]] %s1132_s27  ;;  %p29_p0 = scmp.ge.s32.totalorder %s28_s7, 8 }
   0x9   : > { %s31_s8 = sadd.s32 1, %s1132_s27  ;;  %p199_p1 = scmp.ne.s32.totalorder %s1116_s23, %s1112_s22 }
   0xa   : > { %p200_p2 = scmp.eq.s32.totalorder %s854_s29, 15  ;;  %s1406_s7 = smov (%p29_p0, %s28_s7), 0 }
   0xb   : > { %1387 = sst [smem:[#allocation10_spill]] %s1406_s7  ;;  %s1408_s8 = smov (!%p29_p0, %s31_s8), %s1132_s27 }
   0xc   : > { %p1227_p3 = por %p200_p2, %p199_p1  ;;  %p205_p4 = scmp.ne.s32.totalorder %s1112_s22, %s1108_s21 }
   0xd   : > { %p33_p5 = scmp.ge.s32.totalorder %s1408_s8, 2  ;;  %p206_p6 = scmp.eq.s32.totalorder %s855_s30, 15 }
   0xe   : > { %p858_p7 = scmp.ge.s32.totalorder %s1136_s28, 1  ;;  %p266_p8 = scmp.lt.s32.totalorder %s1136_s28, 17 }
   0xf   : > { %s1410_s8 = smov (%p33_p5, %s1408_s8), 0  ;;  %p1237_p9 = por %p206_p6, %p205_p4 }
  0x10   : > { %1389 = sst [smem:[#allocation11_spill]] %s1410_s8  ;;  %p267_p10 = pnand %p858_p7, %p266_p8 }
  0x11   : > { %s1390_s10 = scalar_select %p1237_p9, 1, 0 }
  0x12   : > { %s186_s11 = ssub.s32 %s1132_s27, %s1410_s8  ;;  %s189_s12 = sadd.s32 1, %s1116_s23 }
  0x13   : > { %1391 = sst [smem:[#allocation12_spill]] %s1390_s10  ;;  %p187_p11 = scmp.eq.s32.totalorder %s186_s11, 0 }
  0x14   : > { %270 = sbr.rel (%p267_p10) target bundleno = 1268 (0x4f4), region = 44  ;;  %s1380_s14 = sand.u32 (!%p267_p10), 1, %s1112_s22  }
  0x15   : > { %s1245_s13 = scalar_select %p187_p11, %s1116_s23, %s189_s12  }
  0x16   : > { %p315_p12 = scmp.lt.s32.totalorder (!%p267_p10), %s1124_s25, 1  ;;  %s859_s15 = sshll.u32 (!%p267_p10), %s1380_s14, 4 }
  0x17   : > { %1392 = sst [smem:[#allocation13_spill]] %s1245_s13  ;;  %p320_p13 = scmp.lt.s32.totalorder (!%p267_p10), %s1120_s24, 7 }
  0x18   : > { %p869_p0 = scmp.ne.s32.totalorder (!%p267_p10), %s1120_s24, 0 }
  0x1b   : > { %s316_s16 = scalar_select %p315_p12, %s1124_s25, 1 }
  0x1c   : > { %s321_s17 = scalar_select %p320_p13, %s1120_s24, 7 }
  0x1d   : > { %s890_s18 = sshll.u32 %s316_s16, 3  ;;  %343 = sbr.rel (%p869_p0) target bundleno = 36 (0x24), region = 48  ;;  %v870_v0 = vld [vmem:[%s1374_s5] ss:$0 sm:$0xff] (!%p869_p0)  ;;  %vm351_vm0 = vcmask (!%p869_p0), 261120  }
  0x1e   : > { %s319_s29 = scalar_lea.vmem %s1369_s0, %s890_s18  ;;  %s891_s30 = sshll.u32 %s321_s17, 4  ;;  %352 = vst.msk [vmem:[#allocation2] sm:$0xff] (!%p869_p0), %vm351_vm0, %v870_v0  ;;  %353 = vst.msk [vmem:[#allocation2 + $0x8] sm:$0xff] (!%p869_p0), %vm351_vm0, %v870_v0 }
  0x1f   : > { %s324_s8 = scalar_lea.vmem %s1370_s1, %s891_s30  ;;  %s329_s26 = scalar_lea.vmem %s1371_s2, %s891_s30 }
  0x20   : > { %s1266_s14 = scalar_lea.vmem %s1372_s3, %s891_s30  ;;  %s868_s10 = sshll.u32 %s321_s17, 1 }
  0x21   : > { %s1271_s19 = scalar_lea.vmem %s1373_s4, %s868_s10  ;;  %s1273_s18 = scalar_lea.vmem [#allocation3], %s859_s15 }
  0x24 PF: > { %v1027_v1 = vld [vmem:[%s329_s26] sm:$0xff]   ;;  %v1138_v2 = vmov 0.0   ;;  %v1028_v3 = vld [vmem:[%s329_s26 + $0x8] sm:$0xff]   ;;  %vm1139_vm1 = vmmov 0   ;;  %vm386_vm2 = vcmask 261120   ;;  %vm539_vm3 = vcmask 31744  }
  0x25   : > { %918 = vmatprep.subr.bf16.mxu1 %v1138_v2  ;;  %910 = vmatprep.subr.bf16.mxu0 %v1138_v2  ;;  %v1029_v4 = vld [vmem:[%s324_s8] sm:$0xff]   ;;  %v1031_v6 = vld [vmem:[%s324_s8 + $0x8] sm:$0xff]   ;;  %vm587_vm4 = vcmask 130048   ;;  %vm662_vm5 = vcmask 1041408   ;;  %p884_p1 = scmp.ne.s32.totalorder %s1120_s24, 7 }
  0x26   : > { %919 = vmatpush3.bf16.msra.mxu1 %v1027_v1  ;;  %922 = vmatprep.mubr.msk.bf16.mxu1 %vm1139_vm1, %v1138_v2  ;;  %v1030_v5 = vld [vmem:[%s319_s29] sm:$0xff]   ;;  %v1033_v19 = vld [vmem:[%s1266_s14 + $0x8] sm:$0xff]  }
  0x27   : > { %920 = vmatprep.subr.bf16.mxu1 %v1138_v2  ;;  %914 = vmatprep.mubr.msk.bf16.mxu0 %vm1139_vm1, %v1138_v2  ;;  %v1032_v18 = vld [vmem:[%s1266_s14] sm:$0xff]   ;;  %v657_v57 = vld [vmem:[#allocation2 + $0x8] sm:$0xff] }
  0x28   : > { %911 = vmatpush3.bf16.msra.mxu0 %v1029_v4  ;;  %v368_v41 = vld [vmem:[%s1271_s19] sm:$0x3] }
  0x29   : > { %912 = vmatprep.subr.bf16.mxu0 %v1138_v2  ;;  %v664_v42 = vsel %vm662_vm5, %v368_v41, 0  ;;  %v656_v55 = vld [vmem:[#allocation2] sm:$0xff] }
  0x2a   : > { %921 = vmatpush3.bf16.msra.mxu1 %v1028_v3 }
  0x2b   : > { %934 = vmatprep.subr.bf16.mxu1 %v1138_v2 }
  0x2c   : > { %913 = vmatpush3.bf16.msra.mxu0 %v1031_v6 }
  0x2d   : > { %923 = vmatmul.mubr.msk.bf16.vlgmr.msra.gmra.mrb[0].mxu1 %vm386_vm2, %v1030_v5  ;;  %926 = vmatprep.subr.bf16.mxu0 %v1138_v2 }
  0x2e   : > { %936 = vmatprep.mubr.msk.bf16.mxu1 %vm1139_vm1, %v1138_v2 }
  0x2f   : > { %915 = vmatmul.mubr.msk.bf16.vlgmr.msra.gmra.mrb[0].mxu0 %vm386_vm2, %v1030_v5 }
  0x30   : > { %930 = vmatprep.mubr.msk.bf16.mxu0 %vm1139_vm1, %v1138_v2  ;;  %927 = vmatpush3.bf16.msra.mxu0 %v1032_v18 }
  0x31   : > { %928 = vmatprep.subr.bf16.mxu0 %v1138_v2 }
  0x34   : > { %929 = vmatpush3.bf16.msra.mxu0 %v1033_v19 }
  0x35   : > { %940 = vmatprep.subr.bf16.mxu0 %v1138_v2 }
  0x37   : > { %931 = vmatmul.mubr.msk.bf16.vlgmr.msra.gmra.mrb[4].mxu0 %vm386_vm2, %v1030_v5 }
  0x38   : > { %942 = vmatprep.mubr.msk.bf16.mxu0 %vm1139_vm1, %v1138_v2 }
 0x100   : > { %v477_v7 = vpop.f32.mrb[0].mxu1 }
 0x101   : > { %v924_v8 = vpop.f32.mrb[1].mxu1 }
 0x102   : > { %v480_v9 = vpop.f32.mrb[2].mxu1  ;;  %v424_v10 = vpop.f32.mrb[0].mxu0 }
 0x103   : > { %v538_v11 = vpack.c.bf16 %v480_v9, %v477_v7  ;;  %v925_v12 = vpop.f32.mrb[3].mxu1  ;;  %v916_v13 = vpop.f32.mrb[1].mxu0 }
 0x104   : > { %v427_v14 = vpop.f32.mrb[2].mxu0 }
 0x105   : > { %v544_v15 = vsel %vm539_vm3, %v538_v11, 0  ;;  %v537_v16 = vpack.c.bf16 %v427_v14, %v424_v10  ;;  %v917_v17 = vpop.f32.mrb[3].mxu0 }
 0x106   : > { %935 = vmatpush3.bf16.xpose.msra.mxu1 %v544_v15 }
 0x107   : > { %946 = vmatprep.subr.bf16.mxu1 %v1138_v2 }
 0x10a   : > { %v530_v36 = vpop.f32.mrb[4].mxu0 }
 0x10b   : > { %v932_v37 = vpop.f32.mrb[5].mxu0 }
 0x10c   : > { %v533_v38 = vpop.f32.mrb[6].mxu0 }
 0x10d   : > { %937 = vmatmul.mubr.msk.bf16.vlgmr.msra.gmra.mrb[4].mxu1 %vm539_vm3, %v537_v16  ;;  %v933_v39 = vpop.f32.mrb[7].mxu0  ;;  %v611_v40 = vpack.c.bf16 %v533_v38, %v530_v36 }
 0x10e   : > { %948 = vmatprep.mubr.msk.bf16.mxu1 %vm1139_vm1, %v1138_v2  ;;  %947 = vmatpush3.bf16.msra.mxu1 %v664_v42 }
 0x10f   : > { %941 = vmatpush3.bf16.msra.mxu0 %v611_v40 }
 0x1e0   : > { %v580_v20 = vpop.f32.mrb[4].mxu1 }
 0x1e1   : > { %v938_v21 = vpop.f32.mrb[5].mxu1  ;;  %v588_v22 = vsel %vm587_vm4, %v580_v20, -inf }
 0x1e2   : > { %589 = vmax.xlane.f32.xlu0 %v588_v22  ;;  %v583_v23 = vpop.f32.mrb[6].mxu1 }
 0x1e3   : > { %v939_v24 = vpop.f32.mrb[7].mxu1  ;;  %v591_v25 = vsel %vm587_vm4, %v583_v23, -inf }
 0x1e6   : > { %592 = vmax.xlane.f32.xlu0 %v591_v25 }
 0x26f   : > { %v590_v26 = vpop.xlane.xlu0 %589 }
 0x270   : > { %v594_v27 = vsub.f32 %v580_v20, %v590_v26 }
 0x272   : > { %v596_v28 = vmul.f32 1.442695, %v594_v27 }
 0x273   : > { %v593_v29 = vpop.xlane.xlu0 %592 }
 0x274   : > { %1034 = vpow2.f32 %v596_v28  ;;  %v595_v30 = vsub.f32 %v583_v23, %v593_v29 }
 0x276   : > { %v598_v31 = vmul.f32 1.442695, %v595_v30 }
 0x278   : > { %1036 = vpow2.f32 %v598_v31 }
 0x27e   : > { %v1035_v32 = vpop.eup %1034 }
 0x27f   : > { %v600_v33 = vsel %vm587_vm4, %v1035_v32, 0.0 }
 0x280   : > { %601 = vadd.xlane.f32.xlu1 %v600_v33 }
 0x282   : > { %v1037_v34 = vpop.eup %1036 }
 0x283   : > { %v603_v35 = vsel %vm587_vm4, %v1037_v34, 0.0 }
 0x284   : > { %604 = vadd.xlane.f32.xlu1 %v603_v35 }
 0x30d   : > { %v602_v43 = vpop.xlane.xlu1 %601 }
 0x30e   : > { %1038 = vrcp.f32 %v602_v43 }
 0x311   : > { %v605_v44 = vpop.xlane.xlu1 %604 }
 0x312   : > { %1040 = vrcp.f32 %v605_v44 }
 0x318   : > { %v1039_v45 = vpop.eup %1038 }
 0x319   : > { %v608_v47 = vmul.f32 %v1039_v45, %v1035_v32 }
 0x31c   : > { %v1041_v46 = vpop.eup %1040 }
 0x31d   : > { %v609_v48 = vmul.f32 %v1041_v46, %v1037_v34 }
 0x31f   : > { %v610_v49 = vpack.c.bf16 %v609_v48, %v608_v47 }
 0x321   : > { %943 = vmatmul.mubr.msk.bf16.vlgmr.msra.gmra.mrb[8].mxu0 %vm587_vm4, %v610_v49 }
 0x3f4   : > { %v649_v50 = vpop.f32.mrb[8].mxu0 }
 0x3f5   : > { %v944_v51 = vpop.f32.mrb[9].mxu0 }
 0x3f6   : > { %v652_v52 = vpop.f32.mrb[10].mxu0 }
 0x3f7   : > { %v658_v53 = vpack.c.bf16 %v652_v52, %v649_v50  ;;  %v945_v54 = vpop.f32.mrb[11].mxu0 }
 0x3f9   : > { %949 = vmatmul.mubr.msk.bf16.vlgmr.msra.gmra.mrb[8].mxu1 %vm539_vm3, %v658_v53 }
 0x4cb   : > { %714 = sbr.rel (%p884_p1) target bundleno = 1242 (0x4da), region = 52 }
 0x4cc   : > { %v700_v56 = vpop.f32.mrb[8].mxu1 }
 0x4cd   : > { %v707_v58 = vadd.f32 %v700_v56, %v656_v55  ;;  %v950_v59 = vpop.f32.mrb[9].mxu1 }
 0x4ce   : > { %v703_v60 = vpop.f32.mrb[10].mxu1 }
 0x4cf   : > { %709 = vst.msk [vmem:[#allocation2] sm:$0xff] %vm386_vm2, %v707_v58  ;;  %v708_v61 = vadd.f32 %v703_v60, %v657_v57  ;;  %v951_v62 = vpop.f32.mrb[11].mxu1 }
 0x4d1   : > { %710 = vst.msk [vmem:[#allocation2 + $0x8] sm:$0xff] %vm386_vm2, %v708_v61 }
 0x4d6   : > { %v715_v63 = vld [vmem:[#allocation2] sm:$0xff] }
 0x4d7   : > { %717 = vst.msk [vmem:[%s1273_s18] sm:$0xff] %vm386_vm2, %v715_v63 }
 0x4d8   : > { %v716_v0 = vld [vmem:[#allocation2 + $0x8] sm:$0xff] }
 0x4d9   : > { %718 = vst.msk [vmem:[%s1273_s18 + $0x8] sm:$0xff] %vm386_vm2, %v716_v0 }
 0x4da PF: > { %s894_s21 = sshll.u32 %s1124_s25, 8  ;;  %s733_s24 = sshll.u32 %s1273_s18, 4  ;;  %s1313_s24 = int_to_ptr.vmem [resolvable:$true] %s733_s24 }
 0x4db   : > { %s1310_s27 = scalar_lea.hbm %s1375_s6, %s894_s21  ;;  %s1393_s7 = sand.u32 1, %s1112_s22  }
 0x4dc   : > { %s1317_s8 = scalar_lea.sflag [#allocation4], %s1393_s7  ;;  %s1042_s10 = scalar_lea.vmem %s1313_s24, 256 }
 0x4dd   : > { %p1043_p2 = scmp.ne.s32.totalorder %s1313_s24, %s1042_s10  ;;  %s1140_s25 = smov [#allocation3]  }
 0x4de   : > { %s1046_s13 = sshll.u32 %s1140_s25, 4  ;;  %s1047_s13 = int_to_ptr.vmem [resolvable:$false] %s1046_s13 }
 0x4df   : > { %p1044_p4 = pnand %p1043_p2, %p1227_p3  ;;  %s1048_s14 = scalar_lea.vmem %s1047_s13, 512 }
 0x4e0   : > { %p1049_p6 = scmp.lt.s32.totalorder %s1313_s24, %s1047_s13  ;;  %p1050_p7 = scmp.lt.s32.totalorder %s1048_s14, %s1042_s10 }
 0x4e1   : > { %p1045_p5 = pneg %p1044_p4 }
 0x4e2   : > { %p1051_p8 = por %p1050_p7, %p1049_p6 }
 0x4e4   : > { %p1052_p10 = pnand %p1051_p8, %p1045_p5 }
 0x4e6   : > { %1055 = shalt.err (!%p1052_p10)
}
 0x4e7   : > { %s1056_s15 = scalar_lea.hbm %s1310_s27, 256  ;;  %s1060_s30 = scalar_lea.hbm %s1375_s6, 512 }
 0x4e8   : > { %p1057_p11 = scmp.ne.s32.totalorder %s1310_s27, %s1056_s15  ;;  %p1061_p0 = scmp.lt.u32.totalorder %s1310_s27, %s1375_s6 }
 0x4e9   : > { %p1062_p1 = scmp.lt.u32.totalorder %s1060_s30, %s1056_s15  ;;  %p1064_p4 = scmp.lt.u32.totalorder %s1056_s15, %s1310_s27 }
 0x4ea   : > { %p1058_p12 = pnand %p1057_p11, %p1227_p3 }
 0x4eb   : > { %p1063_p2 = por %p1062_p1, %p1061_p0 }
 0x4ec   : > { %p1059_p13 = pneg %p1058_p12 }
 0x4ed   : > { %p1065_p5 = por %p1064_p4, %p1063_p2 }
 0x4ef   : > { %p1066_p6 = pnand %p1065_p5, %p1059_p13 }
 0x4f1   : > { %1069 = shalt.err (!%p1066_p6)
}
 0x4f2   : > { %s1141_s19 = smov 128   ;;  %s1142_s18 = smov 8  }
 0x4f3   : > { %952 = dma.vmem_to_hbm [thread:$0]  (%p1227_p3), %s1313_s24, 256, %s1310_s27, %s1317_s8, %s1141_s19, %s1141_s19, %s1142_s18  }
 0x4f4 PF: > { %s1394_s20 = sld [smem:[#allocation6_spill]]  ;;  %p958_p7 = scmp.ge.s32.totalorder %s1136_s28, 2 }
 0x4f6   : > { %p955_p8 = pnand %p958_p7, %p1237_p9 }
 0x4fa   : > { %s748_s21 = sand.u32 1, %s1394_s20  }
 0x4fb   : > { %s749_s23 = scalar_lea.sflag [#allocation4], %s748_s21 }
 0x4fc   : > { %1103 = dma.done.wait (!%p955_p8), %s749_s23, 256  }
 0x4fd   : > { %1105 = vsyncadd (!%p955_p8), %s749_s23, 4294967040  ;;  %s19_s28 = sadd.s32 1, %s1136_s28   ;;  %s1396_s26 = sld [smem:[#allocation7_spill]] }
 0x4fe   : > { %p16_p10 = scmp.ge.s32.totalorder %s19_s28, 18   ;;  %s1397_s23 = sld [smem:[#allocation13_spill]] }
 0x4ff   : > { %s1398_s24 = sld [smem:[#allocation8_spill]]  ;;  %s1399_s25 = sld [smem:[#allocation9_spill]] }
 0x500   : > { %s1400_s9 = sld [smem:[#allocation10_spill]]  ;;  %s1401_s27 = sld [smem:[#allocation11_spill]] }
 0x501   : > { %s1402_s21 = smov %s1112_s22  ;;  %18 = sbr.rel (!%p16_p10) target bundleno = 5 (0x5), region = 99 }
 0x503   : > { %s1403_s22 = smov %s1396_s26 }
 0x506   : > { %s1404_s26 = smov %s1400_s9 }
 0x508   :  { %754 = vsyncpa [#allocation4], 1 }
 0x509   :  { %756 = vsyncpa [#allocation4 + $0x1], 1 }

</bundles_post_ra>
